<compile_context>
chip_gen: v6e
topology: v6e:2x2x1
jax: 0.10.0
libtpu: 0.0.40
codegen_flags: <defaults>
</compile_context>

<pallas_src>
import functools

import jax
import jax.numpy as jnp
from jax.experimental import pallas as pl
from jax.experimental.pallas import tpu as pltpu


def _drsl_kernel(pred_ref, labels_ref, out_ref, *, n_total, n_classes,
                 tile_rows, tiles_per_part, a, b):
    p = pl.program_id(0)   # part (one per TensorCore on v7x; single part elsewhere)
    i = pl.program_id(1)   # row-tile within the part (reduction axis)

    # Output block is resident across the reduction axis -> acts as the accumulator.
    @pl.when(i == 0)
    def _():
        out_ref[...] = jnp.zeros_like(out_ref)

    pred = pred_ref[...].astype(jnp.float32)   # (TN, C); HBM stays native dtype
    labels = labels_ref[...]                   # (TN, 1) int32

    # Global row index of every row in this tile (unclamped): masks (a) the overhang of
    # the last partial tile and (b) fully out-of-range tiles whose block index was
    # clamped in the index_map.
    tile_idx = p * tiles_per_part + i
    rows = tile_idx * tile_rows + jax.lax.broadcasted_iota(
        jnp.int32, (tile_rows, 1), 0)
    valid = rows < n_total                     # (TN, 1)

    cls = jax.lax.broadcasted_iota(jnp.int32, (tile_rows, n_classes), 1)
    is_target = cls == labels                  # (TN, C)
    # NOTE: out-of-range labels silently give target_logit == 0 (no ignore_index).

    # ---- per-row reductions over the (TN, C) tile ----
    m = jnp.max(pred, axis=1, keepdims=True)
    lse = jnp.log(jnp.sum(jnp.exp(pred - m), axis=1, keepdims=True)) + m
    sum_all = jnp.sum(pred, axis=1, keepdims=True)
    sum_sq = jnp.sum(pred * pred, axis=1, keepdims=True)
    target_logit = jnp.sum(jnp.where(is_target, pred, 0.0), axis=1, keepdims=True)

    # ---- cross entropy (per row, summed; divided by total N via the a/N factor) ----
    ce_part = jnp.sum(jnp.where(valid, lse - target_logit, 0.0))

    # ---- DRSL negative-logit term, closed-form per row ----
    # mu = masked-mean = (sum_all - p_t)/C  (PyTorch .mean(dim=1) divides by C, not C-1)
    # sum_{j!=t}(p_j - mu)^2 = (sum_sq - p_t^2) - 2*mu*(sum_all - p_t) + (C-1)*mu^2
    s_nt = sum_all - target_logit
    mu = s_nt * (1.0 / n_classes)
    neg_rows = (sum_sq - target_logit * target_logit) \
        - 2.0 * mu * s_nt + float(n_classes - 1) * (mu * mu)
    neg_part = jnp.sum(jnp.where(valid, neg_rows, 0.0))

    # Fold compile-time scale factors per tile; broadcast the scalar over the lane-dense
    # (8, 128) output block (every element carries this part's partial loss).
    out_ref[...] += (a / n_total) * ce_part + b * neg_part


def _choose_tile_rows(n, c, itemsize, target_bytes=2 * 1024 * 1024):
    """~2 MiB pred blocks (multiple-of-8 rows): good DMA efficiency / ~85% of HBM
    roofline, and with double buffering plus f32 temporaries still comfortably inside
    v7x's 64 MiB per-TC VMEM.  No row cap: the byte target alone governs height so
    small-C shapes still get full-size blocks."""
    tn = target_bytes // max(c * itemsize, 1)
    tn = int(max(8, (tn // 8) * 8))
    if tn >= n:
        return n                      # single full-height block
    return tn


def _default_num_parts():
    """2 parts only on chips with 2 TensorCores (v7x); single-TC chips (v5e/v6e) get 1
    so the serial parts loop never re-reads clamped tiles on a bandwidth-bound kernel."""
    try:
        kind = jax.devices()[0].device_kind.lower()
    except Exception:
        return 1
    return 2 if "v7" in kind else 1


def drsl_loss(pred, labels, a=1.0, b=0.001, *, tile_rows=None, num_parts=None):
    """pred: (N, C) float logits (any float dtype, no wrapper cast); labels: (N,) ints."""
    n, c = pred.shape
    labels2d = labels.astype(jnp.int32).reshape(n, 1)
    itemsize = jnp.dtype(pred.dtype).itemsize

    tn = tile_rows if tile_rows is not None else _choose_tile_rows(n, c, itemsize)
    tn = min(int(tn), n)
    if tn < n and tn % 8 != 0:
        tn = max(8, (tn // 8) * 8)

    t_total = pl.cdiv(n, tn)
    p_parts = int(num_parts) if num_parts is not None else _default_num_parts()
    p_parts = max(1, p_parts)
    t_part = pl.cdiv(t_total, p_parts)

    def in_idx(part, step):
        # Clamp so redundant trailing steps re-read the last valid tile; their
        # contribution is zeroed inside the kernel by the row-validity mask.
        return (jnp.minimum(part * t_part + step, t_total - 1), 0)

    kernel = functools.partial(
        _drsl_kernel, n_total=n, n_classes=c, tile_rows=tn,
        tiles_per_part=t_part, a=float(a), b=float(b))

    # Live set after the algebraic rewrite: 2x double-buffered native tiles, one f32
    # copy, exp/where/iota (TN,C) temporaries -> ~12x f32-tile bytes, capped at 40 MiB
    # to leave headroom inside v7x's 64 MiB VMEM.
    vmem_limit = int(min(40 * 2**20, max(16 * 2**20, 12 * tn * c * 4)))

    out = pl.pallas_call(
        kernel,
        out_shape=jax.ShapeDtypeStruct((8 * p_parts, 128), jnp.float32),
        grid_spec=pltpu.PrefetchScalarGridSpec(
            num_scalar_prefetch=0,
            grid=(p_parts, t_part),
            in_specs=[
                pl.BlockSpec((tn, c), in_idx),     # pred tile (auto double-buffered)
                pl.BlockSpec((tn, 1), in_idx),     # labels tile (tiny)
            ],
            out_specs=pl.BlockSpec((8, 128), lambda part, step: (part, 0)),
        ),
        compiler_params=pltpu.CompilerParams(
            dimension_semantics=("parallel", "arbitrary"),
            vmem_limit_bytes=vmem_limit,
        ),
        cost_estimate=pl.CostEstimate(
            flops=int(8 * n * c),
            transcendentals=int(n * c),
            bytes_accessed=int(n * c * itemsize + n * 4 + 8 * p_parts * 128 * 4),
        ),
    )(pred, labels2d)

    # Every element of part p's (8, 128) block holds that part's partial loss.
    return jnp.sum(out[::8, 0])


def _reference_drsl(pred, labels, a=1.0, b=0.001):
    # pure-JAX reference mirroring the PyTorch module exactly
    pred = pred.astype(jnp.float32)
    n, c = pred.shape
    lse = jax.nn.logsumexp(pred, axis=1)
    tgt = pred[jnp.arange(n), labels]
    ce = jnp.mean(lse - tgt)
    non_target = jnp.arange(c)[None, :] != labels[:, None]
    neg_mean = jnp.sum(jnp.where(non_target, pred, 0.0), axis=1, keepdims=True) / c
    neg_sq = jnp.where(non_target, (pred - neg_mean) ** 2, 0.0)
    return a * ce + b * jnp.sum(neg_sq)


if __name__ == "__main__":
    key = jax.random.PRNGKey(0)
    k1, k2, k3, k4, k5, k6 = jax.random.split(key, 6)

    # Case 1: small aligned shape (single full-height block).
    n1, c1 = 8, 16
    pred1 = jax.random.normal(k1, (n1, c1), dtype=jnp.float32)
    labels1 = jax.random.randint(k2, (n1,), 0, c1, dtype=jnp.int32)
    loss1 = drsl_loss(pred1, labels1, a=1.0, b=0.001)
    jax.block_until_ready(loss1)
    ref1 = _reference_drsl(pred1, labels1, a=1.0, b=0.001)
    assert jnp.allclose(loss1, ref1, rtol=1e-5, atol=1e-5), (loss1, ref1)

    # Case 2: unaligned batch with a forced small tile -> exercises multi-tile
    # accumulation, partial-tile masking and the clamped out-of-range tile path.
    n2, c2 = 20, 24
    pred2 = jax.random.normal(k3, (n2, c2), dtype=jnp.float32)
    labels2 = jax.random.randint(k4, (n2,), 0, c2, dtype=jnp.int32)
    loss2 = drsl_loss(pred2, labels2, a=1.0, b=0.001, tile_rows=8)
    jax.block_until_ready(loss2)
    ref2 = _reference_drsl(pred2, labels2, a=1.0, b=0.001)
    assert jnp.allclose(loss2, ref2, rtol=1e-5, atol=1e-5), (loss2, ref2)

    # Case 3: default (uncapped) tile sizing path with unaligned N and odd C, plus
    # larger-magnitude logits to sanity-check the closed-form neg term numerically.
    n3, c3 = 200, 33
    pred3 = 4.0 * jax.random.normal(k5, (n3, c3), dtype=jnp.float32)
    labels3 = jax.random.randint(k6, (n3,), 0, c3, dtype=jnp.int32)
    loss3 = drsl_loss(pred3, labels3, a=1.0, b=0.001)
    jax.block_until_ready(loss3)
    ref3 = _reference_drsl(pred3, labels3, a=1.0, b=0.001)
    assert jnp.allclose(loss3, ref3, rtol=1e-4, atol=1e-4), (loss3, ref3)

    print("KERNEL_OK")
</pallas_src>

<mosaic_0001>
module attributes {stable_mosaic.version = 11 : i64} {
  func.func @_drsl_kernel(%arg0: i32, %arg1: i32, %arg2: memref<8x16xf32, #tpu.memory_space<vmem>>, %arg3: memref<8x1xi32, #tpu.memory_space<vmem>>, %arg4: memref<8x128xf32, #tpu.memory_space<vmem>>) attributes {dimension_semantics = [#tpu.dimension_semantics<parallel>, #tpu.dimension_semantics<arbitrary>], iteration_bounds = array<i64: 1, 1>, scalar_prefetch = 0 : i64, scratch_operands = 0 : i64, tpu.core_type = #tpu.core_type<tc>, window_params = [{transform_indices = @transform_0, window_bounds = array<i64: 8, 16>}, {transform_indices = @transform_1, window_bounds = array<i64: 8, 1>}, {transform_indices = @transform_2, window_bounds = array<i64: 8, 128>}]} {
    %c0_i32 = arith.constant 0 : i32
    %0 = arith.cmpi eq, %arg1, %c0_i32 : i32
    %1 = arith.extui %0 : i1 to i32
    %c0_i32_0 = arith.constant 0 : i32
    %2 = arith.cmpi ne, %1, %c0_i32_0 : i32
    scf.if %2 {
      %cst_23 = arith.constant 0.000000e+00 : f32
      %67 = vector.broadcast %cst_23 : f32 to vector<8x128xf32>
      %c0_24 = arith.constant 0 : index
      %c0_25 = arith.constant 0 : index
      %68 = vector.load %arg4[%c0_24, %c0_25] : memref<8x128xf32, #tpu.memory_space<vmem>>, vector<8x128xf32>
      tpu.vector_store %arg4[%c0_24, %c0_25], %67 {strides = array<i32>} : memref<8x128xf32, #tpu.memory_space<vmem>>, vector<8x128xf32>,
    } else {
    }
    %c0 = arith.constant 0 : index
    %c0_1 = arith.constant 0 : index
    %3 = vector.load %arg2[%c0, %c0_1] : memref<8x16xf32, #tpu.memory_space<vmem>>, vector<8x16xf32>
    %c0_2 = arith.constant 0 : index
    %c0_3 = arith.constant 0 : index
    %4 = vector.load %arg3[%c0_2, %c0_3] : memref<8x1xi32, #tpu.memory_space<vmem>>, vector<8x1xi32>
    %c1_i32 = arith.constant 1 : i32
    %5 = arith.muli %arg0, %c1_i32 : i32
    %6 = arith.addi %5, %arg1 : i32
    %c8_i32 = arith.constant 8 : i32
    %7 = arith.muli %6, %c8_i32 : i32
    %8 = tpu.iota {dimensions = array<i32: 0>} : vector<8x1xi32>
    %9 = vector.broadcast %7 : i32 to vector<8x1xi32>
    %10 = arith.addi %9, %8 : vector<8x1xi32>
    %c8_i32_4 = arith.constant 8 : i32
    %11 = vector.broadcast %c8_i32_4 : i32 to vector<8x1xi32>
    %12 = arith.cmpi slt, %10, %11 : vector<8x1xi32>
    %13 = tpu.iota {dimensions = array<i32: 1>} : vector<8x16xi32>
    %14 = vector.broadcast %4 : vector<8x1xi32> to vector<8x16xi32>
    %15 = arith.cmpi eq, %13, %14 : vector<8x16xi32>
    %cst = arith.constant dense<0xFF800000> : vector<8xf32>
    %16 = vector.multi_reduction <maximumf>, %3, %cst [1] : vector<8x16xf32> to vector<8xf32>
    %17 = vector.shape_cast %16 : vector<8xf32> to vector<8x1xf32>
    %18 = vector.broadcast %17 : vector<8x1xf32> to vector<8x16xf32>
    %19 = arith.subf %3, %18 : vector<8x16xf32>
    %20 = math.exp %19 : vector<8x16xf32>
    %cst_5 = arith.constant dense<0.000000e+00> : vector<8xf32>
    %21 = vector.multi_reduction <add>, %20, %cst_5 [1] : vector<8x16xf32> to vector<8xf32>
    %22 = vector.shape_cast %21 : vector<8xf32> to vector<8x1xf32>
    %23 = math.log %22 : vector<8x1xf32>
    %24 = arith.addf %23, %17 : vector<8x1xf32>
    %cst_6 = arith.constant dense<0.000000e+00> : vector<8xf32>
    %25 = vector.multi_reduction <add>, %3, %cst_6 [1] : vector<8x16xf32> to vector<8xf32>
    %26 = vector.shape_cast %25 : vector<8xf32> to vector<8x1xf32>
    %27 = arith.mulf %3, %3 : vector<8x16xf32>
    %cst_7 = arith.constant dense<0.000000e+00> : vector<8xf32>
    %28 = vector.multi_reduction <add>, %27, %cst_7 [1] : vector<8x16xf32> to vector<8xf32>
    %29 = vector.shape_cast %28 : vector<8xf32> to vector<8x1xf32>
    %cst_8 = arith.constant 0.000000e+00 : f32
    %30 = vector.broadcast %cst_8 : f32 to vector<8x16xf32>
    %31 = arith.select %15, %3, %30 : vector<8x16xi1>, vector<8x16xf32>
    %cst_9 = arith.constant dense<0.000000e+00> : vector<8xf32>
    %32 = vector.multi_reduction <add>, %31, %cst_9 [1] : vector<8x16xf32> to vector<8xf32>
    %33 = vector.shape_cast %32 : vector<8xf32> to vector<8x1xf32>
    %34 = arith.subf %24, %33 : vector<8x1xf32>
    %cst_10 = arith.constant 0.000000e+00 : f32
    %35 = vector.broadcast %cst_10 : f32 to vector<8x1xf32>
    %36 = arith.select %12, %34, %35 : vector<8x1xi1>, vector<8x1xf32>
    %37 = vector.shape_cast %36 : vector<8x1xf32> to vector<1x8x1xf32>
    %cst_11 = arith.constant dense<0.000000e+00> : vector<1xf32>
    %38 = vector.multi_reduction <add>, %37, %cst_11 [1, 2] : vector<1x8x1xf32> to vector<1xf32>
    %39 = vector.shape_cast %38 : vector<1xf32> to vector<1x1x1xf32>
    %40 = vector.extract %39[0, 0, 0] : f32 from vector<1x1x1xf32>
    %41 = arith.subf %26, %33 : vector<8x1xf32>
    %cst_12 = arith.constant 6.250000e-02 : f32
    %42 = vector.broadcast %cst_12 : f32 to vector<8x1xf32>
    %43 = arith.mulf %41, %42 : vector<8x1xf32>
    %44 = arith.mulf %33, %33 : vector<8x1xf32>
    %45 = arith.subf %29, %44 : vector<8x1xf32>
    %cst_13 = arith.constant 2.000000e+00 : f32
    %46 = vector.broadcast %cst_13 : f32 to vector<8x1xf32>
    %47 = arith.mulf %46, %43 : vector<8x1xf32>
    %48 = arith.mulf %47, %41 : vector<8x1xf32>
    %49 = arith.subf %45, %48 : vector<8x1xf32>
    %50 = arith.mulf %43, %43 : vector<8x1xf32>
    %cst_14 = arith.constant 1.500000e+01 : f32
    %51 = vector.broadcast %cst_14 : f32 to vector<8x1xf32>
    %52 = arith.mulf %51, %50 : vector<8x1xf32>
    %53 = arith.addf %49, %52 : vector<8x1xf32>
    %cst_15 = arith.constant 0.000000e+00 : f32
    %54 = vector.broadcast %cst_15 : f32 to vector<8x1xf32>
    %55 = arith.select %12, %53, %54 : vector<8x1xi1>, vector<8x1xf32>
    %56 = vector.shape_cast %55 : vector<8x1xf32> to vector<1x8x1xf32>
    %cst_16 = arith.constant dense<0.000000e+00> : vector<1xf32>
    %57 = vector.multi_reduction <add>, %56, %cst_16 [1, 2] : vector<1x8x1xf32> to vector<1xf32>
    %58 = vector.shape_cast %57 : vector<1xf32> to vector<1x1x1xf32>
    %59 = vector.extract %58[0, 0, 0] : f32 from vector<1x1x1xf32>
    %c0_17 = arith.constant 0 : index
    %c0_18 = arith.constant 0 : index
    %60 = vector.load %arg4[%c0_17, %c0_18] : memref<8x128xf32, #tpu.memory_space<vmem>>, vector<8x128xf32>
    %cst_19 = arith.constant 1.250000e-01 : f32
    %61 = arith.mulf %cst_19, %40 : f32
    %cst_20 = arith.constant 1.000000e-03 : f32
    %62 = arith.mulf %cst_20, %59 : f32
    %63 = arith.addf %61, %62 : f32
    %64 = vector.broadcast %63 : f32 to vector<8x128xf32>
    %65 = arith.addf %60, %64 : vector<8x128xf32>
    %c0_21 = arith.constant 0 : index
    %c0_22 = arith.constant 0 : index
    %66 = vector.load %arg4[%c0_21, %c0_22] : memref<8x128xf32, #tpu.memory_space<vmem>>, vector<8x128xf32>
    tpu.vector_store %arg4[%c0_21, %c0_22], %65 {strides = array<i32>} : memref<8x128xf32, #tpu.memory_space<vmem>>, vector<8x128xf32>,
    return
  }
  func.func @transform_0(%arg0: i32, %arg1: i32) -> (i32, i32) {
    %c1_i32 = arith.constant 1 : i32
    %0 = arith.muli %arg0, %c1_i32 : i32
    %1 = arith.addi %0, %arg1 : i32
    %c0_i32 = arith.constant 0 : i32
    %2 = arith.minsi %1, %c0_i32 : i32
    %c0_i32_0 = arith.constant 0 : i32
    %c0_i32_1 = arith.constant 0 : i32
    return %2, %c0_i32_0 : i32, i32
  }
  func.func @transform_1(%arg0: i32, %arg1: i32) -> (i32, i32) {
    %c1_i32 = arith.constant 1 : i32
    %0 = arith.muli %arg0, %c1_i32 : i32
    %1 = arith.addi %0, %arg1 : i32
    %c0_i32 = arith.constant 0 : i32
    %2 = arith.minsi %1, %c0_i32 : i32
    %c0_i32_0 = arith.constant 0 : i32
    %c0_i32_1 = arith.constant 0 : i32
    return %2, %c0_i32_0 : i32, i32
  }
  func.func @transform_2(%arg0: i32, %arg1: i32) -> (i32, i32) {
    %c0_i32 = arith.constant 0 : i32
    %c0_i32_0 = arith.constant 0 : i32
    return %arg0, %c0_i32 : i32, i32
  }
}

</mosaic_0001>

<bundles_post_ra>
// kernel: tpu_custom_call.1
= control target key start
LH: loop header
LB: loop body
LE: loop exit
PB: predicated region body
PF: predicated region fallthrough
CT: control target
= control target key end

     0   :  { %vm86_vm0 = vcmask 130048   ;;  %s242_s0 = inlined_call_operand.vmem [shape: f32[8,16], index: 0, kind: input, shape index: {}]   ;;  %s243_s1 = inlined_call_operand.vmem [shape: s32[8,1], index: 1, kind: input, shape index: {}]   ;;  %s244_s2 = inlined_call_operand.hbm [shape: f32[8,128], index: 2, kind: output, shape index: {}]  }
   0x1   :  { %v71_v0 = vld [vmem:[%s242_s0] sm:$0xff] }
   0x2   :  { %7 = vsyncpa [#allocation3], 0  ;;  %v87_v1 = vsel %vm86_vm0, %v71_v0, -inf  ;;  %v211_v2 = vmov 0   ;;  %v72_v3 = vld [vmem:[%s243_s1] sm:$0xff]  ;;  %v80_v7 = vlaneseq  ;;  %v99_v12 = vsel %vm86_vm0, %v71_v0, 0.0 }
   0x3   :  { %184 = vset.pattern.permute.xlu0 %v211_v2  ;;  %v102_v15 = vmul.f32 %v71_v0, %v71_v0  ;;  %vm112_vm2 = vcmask 7168   ;;  %s212_s16 = smov [#allocation2]  }
   0x4   :  { %88 = vmax.xlane.f32.xlu0 %v87_v1  ;;  %v81_v8 = vand.u32 127, %v80_v7  ;;  %s157_s17 = sshll.u32 %s212_s16, 4  ;;  %s158_s17 = int_to_ptr.vmem [resolvable:$true] %s157_s17 }
   0x5   :  { %v103_v16 = vsel %vm86_vm0, %v102_v15, 0.0  ;;  %s189_s18 = scalar_lea.vmem %s158_s17, 128  ;;  %p194_p1 = scmp.lt.s32.totalorder %s158_s17, %s158_s17 }
   0x6   :  { %p190_p0 = scmp.ne.s32.totalorder %s158_s17, %s189_s18  ;;  %p195_p2 = scmp.lt.s32.totalorder %s189_s18, %s189_s18 }
   0x8   :  { %p196_p3 = por %p195_p2, %p194_p1 }
   0xa   :  { %p197_p4 = pnand %p196_p3, %p190_p0 }
  0x1a   :  { %83 = vperm.xlu0 %184, %v72_v3  }
  0x8d   :  { %v89_v4 = vpop.xlane.xlu0 %88 }
  0x8e   :  { %v90_v5 = vsub.f32 %v71_v0, %v89_v4 }
  0x90   :  { %v91_v6 = vmul.f32 1.442695, %v90_v5 }
  0x92   :  { %185 = vpow2.f32 %v91_v6 }
  0x95   :  { %v84_v9 = vpop.permute.xlu0 %83 }
  0x96   :  { %vm85_vm1 = vcmp.eq.s32.totalorder %v81_v8, %v84_v9 }
  0x97   :  { %v106_v13 = vsel %vm85_vm1, %v71_v0, 0.0 }
  0x98   :  { %v107_v14 = vsel %vm86_vm0, %v106_v13, 0.0 }
  0x9f   :  { %v186_v10 = vpop.eup %185 }
  0xa0   :  { %v93_v11 = vsel %vm86_vm0, %v186_v10, 0.0 }
  0xa1   :  { %94 = vadd.xlane.f32.xlu1 %v93_v11 }
  0xa5   :  { %100 = vadd.xlane.f32.xlu1 %v99_v12 }
  0xa9   :  { %108 = vadd.xlane.f32.xlu1 %v107_v14 }
  0xad   :  { %104 = vadd.xlane.f32.xlu1 %v103_v16 }
 0x12a   :  { %v95_v17 = vpop.xlane.xlu1 %94 }
 0x12b   :  { %187 = vlog2.f32 %v95_v17 }
 0x12e   :  { %v101_v18 = vpop.xlane.xlu1 %100 }
 0x132   :  { %v109_v19 = vpop.xlane.xlu1 %108 }
 0x133   :  { %v123_v20 = vsub.f32 %v101_v18, %v109_v19  ;;  %v125_v21 = vmul.f32 %v109_v19, %v109_v19 }
 0x135   :  { %v124_v22 = vmul.f32 0.0625, %v123_v20 }
 0x136   :  { %v105_v23 = vpop.xlane.xlu1 %104 }
 0x137   :  { %v127_v24 = vmul.f32 2.0, %v124_v22  ;;  %v126_v25 = vsub.f32 %v105_v23, %v125_v21  ;;  %v130_v29 = vmul.f32 %v124_v22, %v124_v22 }
 0x138   :  { %v188_v26 = vpop.eup %187 }
 0x139   :  { %v97_v27 = vmul.f32 0.6931472, %v188_v26  ;;  %v128_v28 = vmul.f32 %v127_v24, %v123_v20  ;;  %v131_v33 = vmul.f32 15.0, %v130_v29 }
 0x13b   :  { %v129_v30 = vsub.f32 %v126_v25, %v128_v28  ;;  %v98_v31 = vadd.f32 %v97_v27, %v89_v4 }
 0x13d   :  { %v110_v32 = vsub.f32 %v98_v31, %v109_v19  ;;  %v132_v35 = vadd.f32 %v131_v33, %v129_v30 }
 0x13f   :  { %v113_v34 = vsel %vm112_vm2, %v110_v32, 0.0  ;;  %v134_v36 = vsel %vm112_vm2, %v132_v35, 0.0 }
 0x140   :  { %114 = vadd.xlane.f32.xlu1 %v113_v34 }
 0x144   :  { %135 = vadd.xlane.f32.xlu1 %v134_v36 }
 0x1c9   :  { %v115_v37 = vpop.xlane.xlu1 %114 }
 0x1ca   :  { %v116_v38 = vrot.slane %v115_v37, 4 }
 0x1cc   :  { %v117_v39 = vadd.f32 %v116_v38, %v115_v37 }
 0x1cd   :  { %v136_v40 = vpop.xlane.xlu1 %135 }
 0x1ce   :  { %v118_v41 = vrot.slane %v117_v39, 2  ;;  %v137_v42 = vrot.slane %v136_v40, 4 }
 0x1d0   :  { %v138_v43 = vadd.f32 %v137_v42, %v136_v40  ;;  %v119_v44 = vadd.f32 %v118_v41, %v117_v39 }
 0x1d2   :  { %v139_v45 = vrot.slane %v138_v43, 2  ;;  %v120_v46 = vrot.slane %v119_v44, 1 }
 0x1d4   :  { %v140_v47 = vadd.f32 %v139_v45, %v138_v43  ;;  %v121_v48 = vadd.f32 %v120_v46, %v119_v44 }
 0x1d6   :  { %177 = vpush %v121_v48  ;;  %v141_v49 = vrot.slane %v140_v47, 1 }
 0x1d8   :  { %v142_v50 = vadd.f32 %v141_v49, %v140_v47 }
 0x1da   :  { %179 = vpush %v142_v50 }
 0x207   :  { %s178_s0 = spop %177 }
 0x208   :  { %s145_s1 = smul.f32 0.125, %s178_s0 }
 0x20b   :  { %s180_s13 = spop %179 }
 0x20c   :  { %s146_s14 = smul.f32 0.001, %s180_s13 }
 0x20e   :  { %s147_s15 = sadd.f32 %s146_s14, %s145_s1 }
 0x210   :  { %v148_v51 = vstv %s147_s15 }
 0x211   :  { %150 = vst [vmem:[#allocation2] sm:$0xff] %v148_v51 }
 0x212   :  { %200 = shalt.err (!%p197_p4)
}
 0x213   :  { %160 = dma.vmem_to_hbm [thread:$0]  %s158_s17, 128, %s244_s2, [#allocation3]  }
 0x214   :  { %209 = dma.done.wait [#allocation3], 128  }
 0x215   :  { %210 = vsyncadd [#allocation3], 4294967168 }
 0x216   :  { %164 = vsyncpa [#allocation3], 1 }

</bundles_post_ra>
